<compile_context>
chip_gen: v6e
topology: v6e:2x2x1
jax: 0.10.0
libtpu: 0.0.40
codegen_flags: <defaults>
</compile_context>

<pallas_src>
import functools
import math

import jax
import jax.numpy as jnp
from jax.experimental import pallas as pl
from jax.experimental.pallas import tpu as pltpu

_LANE = 128


def _round_up(x, m):
    return ((x + m - 1) // m) * m


def _mlp_fused_kernel(*refs, residual_flags, relu_flags):
    """refs = (x_ref, w0_ref, ..., w_{L-1}_ref, o_ref).

    Runs the whole layer stack on one row tile: the activation stays in
    registers/VMEM, weights are VMEM-resident, the output tile is written once.
    """
    x_ref = refs[0]
    o_ref = refs[-1]
    w_refs = refs[1:-1]

    h = x_ref[...]  # (TILE_N, F0_pad) float32
    for w_ref, add_residual, apply_relu in zip(w_refs, residual_flags, relu_flags):
        # bf16 operands, f32 accumulation on the MXU.
        y = jnp.dot(h.astype(jnp.bfloat16), w_ref[...],
                    preferred_element_type=jnp.float32)
        if add_residual:      # Dense: output + input when in_features == out_features
            y = y + h
        if apply_relu:        # MLP: ReLU after every layer except the last
            y = jnp.maximum(y, 0.0)
        h = y
    o_ref[...] = h.astype(o_ref.dtype)


def mlp_forward(x, weights, *, tile_n=512):
    """Fused MLP forward. x: [N, nfeat] f32, weights: list of f32 [F_in, F_out]."""
    n, f_in = x.shape
    dims = [tuple(w.shape) for w in weights]
    assert dims[0][0] == f_in
    for a, b in zip(dims[:-1], dims[1:]):
        assert a[1] == b[0]
    nclass = dims[-1][1]

    # Residual / activation flags come from the ORIGINAL (unpadded) dims.
    residual_flags = tuple(fi == fo for fi, fo in dims)
    relu_flags = tuple(i < len(dims) - 1 for i in range(len(dims)))

    # Pad feature dims to multiples of 128 (lane-dense), rows to the tile size.
    f_pads = [_round_up(dims[0][0], _LANE)] + [_round_up(fo, _LANE) for _, fo in dims]
    tile_n = min(tile_n, _round_up(n, 8))
    n_pad = _round_up(n, tile_n)

    x_p = jnp.zeros((n_pad, f_pads[0]), jnp.float32).at[:n, :f_in].set(
        x.astype(jnp.float32))
    w_ps = []
    for w, pi, po in zip(weights, f_pads[:-1], f_pads[1:]):
        fi, fo = w.shape
        w_p = jnp.zeros((pi, po), jnp.float32).at[:fi, :fo].set(w)
        w_ps.append(w_p.astype(jnp.bfloat16))  # one-time cast; f32 accumulate in-kernel

    grid = (n_pad // tile_n,)
    in_specs = [pl.BlockSpec((tile_n, f_pads[0]), lambda i: (i, 0))]
    for pi, po in zip(f_pads[:-1], f_pads[1:]):
        # Constant index_map -> weight block stays VMEM-resident across the grid.
        in_specs.append(pl.BlockSpec((pi, po), lambda i: (0, 0)))
    out_specs = pl.BlockSpec((tile_n, f_pads[-1]), lambda i: (i, 0))

    kernel = functools.partial(
        _mlp_fused_kernel,
        residual_flags=residual_flags,
        relu_flags=relu_flags,
    )

    out_p = pl.pallas_call(
        kernel,
        out_shape=jax.ShapeDtypeStruct((n_pad, f_pads[-1]), jnp.float32),
        grid=grid,
        in_specs=in_specs,
        out_specs=out_specs,
        compiler_params=pltpu.CompilerParams(
            dimension_semantics=("parallel",),      # row tiles independent (2 TCs on v7x)
            vmem_limit_bytes=32 * 1024 * 1024,      # safe on v5e/v6e/v7x; tiles are small
        ),
    )(x_p, *w_ps)

    return out_p[:n, :nclass]


def init_mlp_params(key, nfeat, nlayers, nhidden, nclass):
    """Deterministic init matching Dense.reset_parameters:
    uniform(-1/sqrt(out_features), 1/sqrt(out_features))."""
    dims = [(nfeat, nhidden)]
    for _ in range(nlayers - 2):
        dims.append((nhidden, nhidden))
    dims.append((nhidden, nclass))
    weights = []
    for fin, fout in dims:
        key, sub = jax.random.split(key)
        stdv = 1.0 / math.sqrt(fout)
        weights.append(
            jax.random.uniform(sub, (fin, fout), jnp.float32, -stdv, stdv)
        )
    return weights


def mlp_reference(x, weights):
    """Pure-JAX reference of MLP.forward (eval mode, bias='none')."""
    h = x
    for w in weights[:-1]:
        y = h @ w
        if w.shape[0] == w.shape[1]:
            y = y + h
        h = jnp.maximum(y, 0.0)
    w = weights[-1]
    y = h @ w
    if w.shape[0] == w.shape[1]:
        y = y + h
    return y


if __name__ == "__main__":
    # Small shapes consistent with the module.
    N = 8        # number of samples / graph nodes
    nfeat = 16
    nhidden = 32
    nclass = 8
    nlayers = 3  # Dense(nfeat->nhidden), Dense(nhidden->nhidden), Dense(nhidden->nclass)

    key = jax.random.PRNGKey(0)
    key, xkey = jax.random.split(key)
    x = jax.random.normal(xkey, (N, nfeat), dtype=jnp.float32)

    weights = init_mlp_params(key, nfeat, nlayers, nhidden, nclass)

    out = mlp_forward(x, weights)
    out = jax.block_until_ready(out)
    assert out.shape == (N, nclass)

    # Tolerance check vs f32 reference (bf16 MXU operands, f32 accumulation).
    ref = mlp_reference(x, weights)
    max_err = float(jnp.max(jnp.abs(out - ref)))
    assert jnp.allclose(out, ref, rtol=5e-2, atol=1e-2), max_err

    print("KERNEL_OK")
</pallas_src>

<mosaic_0001>
module attributes {stable_mosaic.version = 11 : i64} {
  func.func @_mlp_fused_kernel(%arg0: i32, %arg1: memref<8x128xf32, #tpu.memory_space<vmem>>, %arg2: memref<128x128xbf16, #tpu.memory_space<vmem>>, %arg3: memref<128x128xbf16, #tpu.memory_space<vmem>>, %arg4: memref<128x128xbf16, #tpu.memory_space<vmem>>, %arg5: memref<8x128xf32, #tpu.memory_space<vmem>>) attributes {dimension_semantics = [#tpu.dimension_semantics<parallel>], iteration_bounds = array<i64: 1>, scalar_prefetch = 0 : i64, scratch_operands = 0 : i64, tpu.core_type = #tpu.core_type<tc>, window_params = [{transform_indices = @transform_0, window_bounds = array<i64: 8, 128>}, {pipeline_mode = #tpu.pipeline_mode<synchronous>, transform_indices = @transform_1, window_bounds = array<i64: 128, 128>}, {pipeline_mode = #tpu.pipeline_mode<synchronous>, transform_indices = @transform_2, window_bounds = array<i64: 128, 128>}, {pipeline_mode = #tpu.pipeline_mode<synchronous>, transform_indices = @transform_3, window_bounds = array<i64: 128, 128>}, {transform_indices = @transform_4, window_bounds = array<i64: 8, 128>}]} {
    %c0 = arith.constant 0 : index
    %c0_0 = arith.constant 0 : index
    %0 = vector.load %arg1[%c0, %c0_0] : memref<8x128xf32, #tpu.memory_space<vmem>>, vector<8x128xf32>
    %1 = arith.truncf %0 : vector<8x128xf32> to vector<8x128xbf16>
    %c0_1 = arith.constant 0 : index
    %c0_2 = arith.constant 0 : index
    %2 = vector.load %arg2[%c0_1, %c0_2] : memref<128x128xbf16, #tpu.memory_space<vmem>>, vector<128x128xbf16>
    %cst = arith.constant dense<0.000000e+00> : vector<8x128xf32>
    %3 = tpu.matmul %1, %2, %cst {dimension_numbers = #tpu.dot_dimension_numbers<[1], [0], [0], [1], [0, 0, 1, 1], [], []>} : vector<8x128xbf16>, vector<128x128xbf16>, vector<8x128xf32> -> vector<8x128xf32>
    %cst_3 = arith.constant 0.000000e+00 : f32
    %4 = vector.broadcast %cst_3 : f32 to vector<8x128xf32>
    %5 = arith.maximumf %3, %4 : vector<8x128xf32>
    %6 = arith.truncf %5 : vector<8x128xf32> to vector<8x128xbf16>
    %c0_4 = arith.constant 0 : index
    %c0_5 = arith.constant 0 : index
    %7 = vector.load %arg3[%c0_4, %c0_5] : memref<128x128xbf16, #tpu.memory_space<vmem>>, vector<128x128xbf16>
    %cst_6 = arith.constant dense<0.000000e+00> : vector<8x128xf32>
    %8 = tpu.matmul %6, %7, %cst_6 {dimension_numbers = #tpu.dot_dimension_numbers<[1], [0], [0], [1], [0, 0, 1, 1], [], []>} : vector<8x128xbf16>, vector<128x128xbf16>, vector<8x128xf32> -> vector<8x128xf32>
    %9 = arith.addf %8, %5 : vector<8x128xf32>
    %cst_7 = arith.constant 0.000000e+00 : f32
    %10 = vector.broadcast %cst_7 : f32 to vector<8x128xf32>
    %11 = arith.maximumf %9, %10 : vector<8x128xf32>
    %12 = arith.truncf %11 : vector<8x128xf32> to vector<8x128xbf16>
    %c0_8 = arith.constant 0 : index
    %c0_9 = arith.constant 0 : index
    %13 = vector.load %arg4[%c0_8, %c0_9] : memref<128x128xbf16, #tpu.memory_space<vmem>>, vector<128x128xbf16>
    %cst_10 = arith.constant dense<0.000000e+00> : vector<8x128xf32>
    %14 = tpu.matmul %12, %13, %cst_10 {dimension_numbers = #tpu.dot_dimension_numbers<[1], [0], [0], [1], [0, 0, 1, 1], [], []>} : vector<8x128xbf16>, vector<128x128xbf16>, vector<8x128xf32> -> vector<8x128xf32>
    %c0_11 = arith.constant 0 : index
    %c0_12 = arith.constant 0 : index
    %15 = vector.load %arg5[%c0_11, %c0_12] : memref<8x128xf32, #tpu.memory_space<vmem>>, vector<8x128xf32>
    tpu.vector_store %arg5[%c0_11, %c0_12], %14 {strides = array<i32>} : memref<8x128xf32, #tpu.memory_space<vmem>>, vector<8x128xf32>,
    return
  }
  func.func @transform_0(%arg0: i32) -> (i32, i32) {
    %c0_i32 = arith.constant 0 : i32
    %c0_i32_0 = arith.constant 0 : i32
    return %arg0, %c0_i32 : i32, i32
  }
  func.func @transform_1(%arg0: i32) -> (i32, i32) {
    %c0_i32 = arith.constant 0 : i32
    %c0_i32_0 = arith.constant 0 : i32
    %c0_i32_1 = arith.constant 0 : i32
    return %c0_i32, %c0_i32_0 : i32, i32
  }
  func.func @transform_2(%arg0: i32) -> (i32, i32) {
    %c0_i32 = arith.constant 0 : i32
    %c0_i32_0 = arith.constant 0 : i32
    %c0_i32_1 = arith.constant 0 : i32
    return %c0_i32, %c0_i32_0 : i32, i32
  }
  func.func @transform_3(%arg0: i32) -> (i32, i32) {
    %c0_i32 = arith.constant 0 : i32
    %c0_i32_0 = arith.constant 0 : i32
    %c0_i32_1 = arith.constant 0 : i32
    return %c0_i32, %c0_i32_0 : i32, i32
  }
  func.func @transform_4(%arg0: i32) -> (i32, i32) {
    %c0_i32 = arith.constant 0 : i32
    %c0_i32_0 = arith.constant 0 : i32
    return %arg0, %c0_i32 : i32, i32
  }
}

</mosaic_0001>

<bundles_post_ra>
// kernel: tpu_custom_call.1
= control target key start
LH: loop header
LB: loop body
LE: loop exit
PB: predicated region body
PF: predicated region fallthrough
CT: control target
= control target key end

     0   :  { %9 = vsyncpa [#allocation3], 0  ;;  %s748_s0 = inlined_call_operand.hbm [shape: f32[8,128], index: 0, kind: input, shape index: {}]   ;;  %s749_s1 = inlined_call_operand.hbm [shape: bf16[128,128], index: 1, kind: input, shape index: {}]   ;;  %s750_s2 = inlined_call_operand.hbm [shape: bf16[128,128], index: 2, kind: input, shape index: {}]   ;;  %s751_s3 = inlined_call_operand.hbm [shape: bf16[128,128], index: 3, kind: input, shape index: {}]   ;;  %s752_s4 = inlined_call_operand.hbm [shape: f32[8,128], index: 4, kind: output, shape index: {}]  }
   0x1   :  { %10 = vsyncpa [#allocation6], 0 }
   0x2   :  { %11 = vsyncpa [#allocation9], 0 }
   0x3   :  { %12 = vsyncpa [#allocation4], 0  ;;  %s660_s15 = smov [#allocation5]  }
   0x4   :  { %s28_s16 = sshll.u32 %s660_s15, 4  ;;  %s29_s16 = int_to_ptr.vmem [resolvable:$true] %s28_s16 }
   0x5   :  { %s560_s17 = scalar_lea.vmem %s29_s16, 1024  ;;  %p565_p1 = scmp.lt.s32.totalorder %s29_s16, %s29_s16 }
   0x6   :  { %p561_p0 = scmp.ne.s32.totalorder %s29_s16, %s560_s17  ;;  %p566_p2 = scmp.lt.s32.totalorder %s560_s17, %s560_s17 }
   0x8   :  { %p567_p3 = por %p566_p2, %p565_p1 }
   0xa   :  { %p568_p4 = pnand %p567_p3, %p561_p0 }
   0xc   :  { %571 = shalt.err (!%p568_p4)
}
   0xd   :  { %s661_s18 = smov 64   ;;  %s662_s19 = smov 4  }
   0xe   :  { %34 = dma.hbm_to_vmem [thread:$0]  %s749_s1, 1024, %s29_s16, [#allocation6], %s661_s18, %s661_s18, %s662_s19  }
   0xf   :  { %s663_s22 = smov [#allocation2]   ;;  %s664_s24 = smov [#allocation7]  }
  0x10   :  { %s19_s23 = sshll.u32 %s663_s22, 4  ;;  %s40_s25 = sshll.u32 %s664_s24, 4  ;;  %s20_s23 = int_to_ptr.vmem [resolvable:$true] %s19_s23  ;;  %s41_s25 = int_to_ptr.vmem [resolvable:$true] %s40_s25 }
  0x11   :  { %s580_s26 = scalar_lea.vmem %s20_s23, 128  ;;  %p585_p6 = scmp.lt.s32.totalorder %s20_s23, %s20_s23 }
  0x12   :  { %p581_p5 = scmp.ne.s32.totalorder %s20_s23, %s580_s26  ;;  %p586_p7 = scmp.lt.s32.totalorder %s580_s26, %s580_s26 }
  0x14   :  { %p587_p8 = por %p586_p7, %p585_p6 }
  0x16   :  { %p588_p9 = pnand %p587_p8, %p581_p5 }
  0x18   :  { %591 = shalt.err (!%p588_p9)
}
  0x19   :  { %22 = dma.hbm_to_vmem [thread:$0]  %s748_s0, 128, %s20_s23, [#allocation3]  }
  0x1a   :  { %s600_s29 = scalar_lea.vmem %s41_s25, 1024  ;;  %p605_p11 = scmp.lt.s32.totalorder %s41_s25, %s41_s25 }
  0x1b   :  { %p601_p10 = scmp.ne.s32.totalorder %s41_s25, %s600_s29  ;;  %p606_p12 = scmp.lt.s32.totalorder %s600_s29, %s600_s29 }
  0x1d   :  { %p607_p13 = por %p606_p12, %p605_p11 }
  0x1f   :  { %p608_p0 = pnand %p607_p13, %p601_p10 }
  0x21   :  { %611 = shalt.err (!%p608_p0)
}
  0x22   :  { %46 = dma.hbm_to_vmem [thread:$0]  %s750_s2, 1024, %s41_s25, [#allocation6], %s661_s18, %s661_s18, %s662_s19  }
  0x23   :  { %s665_s5 = smov [#allocation8]  }
  0x24   :  { %s52_s6 = sshll.u32 %s665_s5, 4  ;;  %s53_s6 = int_to_ptr.vmem [resolvable:$true] %s52_s6 }
  0x25   :  { %s620_s7 = scalar_lea.vmem %s53_s6, 1024  ;;  %p625_p2 = scmp.lt.s32.totalorder %s53_s6, %s53_s6 }
  0x26   :  { %p621_p1 = scmp.ne.s32.totalorder %s53_s6, %s620_s7  ;;  %p626_p3 = scmp.lt.s32.totalorder %s620_s7, %s620_s7 }
  0x28   :  { %p627_p4 = por %p626_p3, %p625_p2 }
  0x2a   :  { %p628_p5 = pnand %p627_p4, %p621_p1 }
  0x2c   :  { %631 = shalt.err (!%p628_p5)
}
  0x2d   :  { %58 = dma.hbm_to_vmem [thread:$0]  %s751_s3, 1024, %s53_s6, [#allocation9], %s661_s18, %s661_s18, %s662_s19  }
  0x2e   :  { %652 = dma.done.wait [#allocation3], 128  }
  0x2f   :  { %653 = vsyncadd [#allocation3], 4294967168 }
  0x30   :  { %654 = dma.done.wait [#allocation6], 2048  }
  0x31   :  { %655 = vsyncadd [#allocation6], 4294965248 }
  0x32   :  { %656 = dma.done.wait [#allocation9], 1024  }
  0x33   :  { %657 = vsyncadd [#allocation9], 4294966272  ;;  %v666_v0 = vmov 0.0   ;;  %vm667_vm0 = vmmov 0   ;;  %v528_v1 = vld [vmem:[#allocation5 + $0x38] sm:$0xff]   ;;  %v529_v2 = vld [vmem:[#allocation5 + $0x30] sm:$0xff]  }
  0x34   :  { %459 = vmatprep.subr.bf16.mxu0 %v666_v0  ;;  %475 = vmatprep.mubr.msk.bf16.mxu0 %vm667_vm0, %v666_v0  ;;  %v530_v3 = vld [vmem:[#allocation5 + $0x28] sm:$0xff]   ;;  %v536_v4 = vld [vmem:[#allocation7 + $0x38] sm:$0xff]   ;;  %v531_v5 = vld [vmem:[#allocation5 + $0x20] sm:$0xff]   ;;  %s668_s2 = smov [#allocation10]  }
  0x35   :  { %479 = vmatprep.subr.bf16.mxu1 %v666_v0  ;;  %495 = vmatprep.mubr.msk.bf16.mxu1 %vm667_vm0, %v666_v0  ;;  %v537_v6 = vld [vmem:[#allocation7 + $0x30] sm:$0xff]   ;;  %v532_v7 = vld [vmem:[#allocation5 + $0x18] sm:$0xff]   ;;  %v538_v8 = vld [vmem:[#allocation7 + $0x28] sm:$0xff]   ;;  %s397_s3 = sshll.u32 %s668_s2, 4  ;;  %s398_s3 = int_to_ptr.vmem [resolvable:$true] %s397_s3 }
  0x36   :  { %460 = vmatpush3.bf16.msra.mxu0 %v528_v1  ;;  %480 = vmatpush3.bf16.msra.mxu1 %v536_v4  ;;  %v533_v9 = vld [vmem:[#allocation5 + $0x10] sm:$0xff]   ;;  %v539_v10 = vld [vmem:[#allocation7 + $0x20] sm:$0xff]   ;;  %v534_v11 = vld [vmem:[#allocation5 + $0x8] sm:$0xff]   ;;  %s632_s9 = scalar_lea.vmem %s398_s3, 128  ;;  %p637_p7 = scmp.lt.s32.totalorder %s398_s3, %s398_s3 }
  0x37   :  { %461 = vmatprep.subr.bf16.mxu0 %v666_v0  ;;  %481 = vmatprep.subr.bf16.mxu1 %v666_v0  ;;  %v540_v12 = vld [vmem:[#allocation7 + $0x18] sm:$0xff]   ;;  %v535_v13 = vld [vmem:[#allocation5] sm:$0xff]   ;;  %v541_v15 = vld [vmem:[#allocation7 + $0x10] sm:$0xff]   ;;  %p633_p6 = scmp.ne.s32.totalorder %s398_s3, %s632_s9  ;;  %p638_p8 = scmp.lt.s32.totalorder %s632_s9, %s632_s9 }
  0x38   :  { %v72_v14 = vld [vmem:[#allocation2] sm:$0xff]  ;;  %v542_v17 = vld [vmem:[#allocation7 + $0x8] sm:$0xff]   ;;  %v543_v18 = vld [vmem:[#allocation7] sm:$0xff]  }
  0x39   :  { %v73_v16 = vpack.c.bf16 %v72_v14, %v72_v14  ;;  %v544_v19 = vld [vmem:[#allocation8 + $0x38] sm:$0xff]   ;;  %v545_v20 = vld [vmem:[#allocation8 + $0x30] sm:$0xff]   ;;  %v546_v21 = vld [vmem:[#allocation8 + $0x28] sm:$0xff]   ;;  %p639_p9 = por %p638_p8, %p637_p7 }
  0x3a   :  { %462 = vmatpush3.bf16.msra.mxu0 %v529_v2  ;;  %482 = vmatpush3.bf16.msra.mxu1 %v537_v6  ;;  %v547_v22 = vld [vmem:[#allocation8 + $0x20] sm:$0xff]   ;;  %v548_v23 = vld [vmem:[#allocation8 + $0x18] sm:$0xff]   ;;  %v549_v24 = vld [vmem:[#allocation8 + $0x10] sm:$0xff]  }
  0x3b   :  { %463 = vmatprep.subr.bf16.mxu0 %v666_v0  ;;  %483 = vmatprep.subr.bf16.mxu1 %v666_v0  ;;  %v550_v31 = vld [vmem:[#allocation8 + $0x8] sm:$0xff]   ;;  %v551_v32 = vld [vmem:[#allocation8] sm:$0xff]   ;;  %p640_p10 = pnand %p639_p9, %p633_p6 }
  0x3e   :  { %464 = vmatpush3.bf16.msra.mxu0 %v530_v3  ;;  %484 = vmatpush3.bf16.msra.mxu1 %v538_v8 }
  0x3f   :  { %465 = vmatprep.subr.bf16.mxu0 %v666_v0  ;;  %485 = vmatprep.subr.bf16.mxu1 %v666_v0 }
  0x42   :  { %466 = vmatpush3.bf16.msra.mxu0 %v531_v5  ;;  %486 = vmatpush3.bf16.msra.mxu1 %v539_v10 }
  0x43   :  { %467 = vmatprep.subr.bf16.mxu0 %v666_v0  ;;  %487 = vmatprep.subr.bf16.mxu1 %v666_v0 }
  0x46   :  { %468 = vmatpush3.bf16.msra.mxu0 %v532_v7  ;;  %488 = vmatpush3.bf16.msra.mxu1 %v540_v12 }
  0x47   :  { %469 = vmatprep.subr.bf16.mxu0 %v666_v0  ;;  %489 = vmatprep.subr.bf16.mxu1 %v666_v0 }
  0x4a   :  { %470 = vmatpush3.bf16.msra.mxu0 %v533_v9  ;;  %490 = vmatpush3.bf16.msra.mxu1 %v541_v15 }
  0x4b   :  { %471 = vmatprep.subr.bf16.mxu0 %v666_v0  ;;  %491 = vmatprep.subr.bf16.mxu1 %v666_v0 }
  0x4e   :  { %472 = vmatpush3.bf16.msra.mxu0 %v534_v11  ;;  %492 = vmatpush3.bf16.msra.mxu1 %v542_v17 }
  0x4f   :  { %473 = vmatprep.subr.bf16.mxu0 %v666_v0  ;;  %493 = vmatprep.subr.bf16.mxu1 %v666_v0 }
  0x52   :  { %474 = vmatpush3.bf16.msra.mxu0 %v535_v13  ;;  %494 = vmatpush3.bf16.msra.mxu1 %v543_v18 }
  0x53   :  { %499 = vmatprep.subr.bf16.mxu0 %v666_v0 }
  0x55   :  { %476 = vmatmul.mubr.bf16.vlgmr.msra.gmra.mxu0 %v73_v16 }
  0x56   :  { %515 = vmatprep.mubr.msk.bf16.mxu0 %vm667_vm0, %v666_v0  ;;  %500 = vmatpush3.bf16.msra.mxu0 %v544_v19 }
  0x57   :  { %501 = vmatprep.subr.bf16.mxu0 %v666_v0 }
  0x5a   :  { %502 = vmatpush3.bf16.msra.mxu0 %v545_v20 }
  0x5b   :  { %503 = vmatprep.subr.bf16.mxu0 %v666_v0 }
  0x5e   :  { %504 = vmatpush3.bf16.msra.mxu0 %v546_v21 }
  0x5f   :  { %505 = vmatprep.subr.bf16.mxu0 %v666_v0 }
  0x62   :  { %506 = vmatpush3.bf16.msra.mxu0 %v547_v22 }
  0x63   :  { %507 = vmatprep.subr.bf16.mxu0 %v666_v0 }
  0x66   :  { %508 = vmatpush3.bf16.msra.mxu0 %v548_v23 }
  0x67   :  { %509 = vmatprep.subr.bf16.mxu0 %v666_v0 }
  0x6a   :  { %510 = vmatpush3.bf16.msra.mxu0 %v549_v24 }
  0x6b   :  { %511 = vmatprep.subr.bf16.mxu0 %v666_v0 }
  0x6e   :  { %512 = vmatpush3.bf16.msra.mxu0 %v550_v31 }
  0x6f   :  { %513 = vmatprep.subr.bf16.mxu0 %v666_v0 }
  0x72   :  { %514 = vmatpush3.bf16.msra.mxu0 %v551_v32 }
 0x115   :  { %v172_v25 = vpop.f32.mrf.mxu0 }
 0x116   :  { %v178_v26 = vmax.f32 %v172_v25, 0.0 }
 0x117   :  { %v477_v27 = vpop.f32.mrf.mxu0 }
 0x118   :  { %v179_v28 = vpack.c.bf16 %v178_v26, %v178_v26 }
 0x119   :  { %v175_v29 = vpop.f32.mrf.mxu0 }
 0x11a   :  { %496 = vmatmul.mubr.bf16.vlgmr.msra.gmra.mxu1 %v179_v28 }
 0x11b   :  { %v478_v30 = vpop.f32.mrf.mxu0 }
 0x1da   :  { %v278_v33 = vpop.f32.mrf.mxu1 }
 0x1db   :  { %v279_v34 = vadd.f32 %v278_v33, %v178_v26 }
 0x1dc   :  { %v497_v35 = vpop.f32.mrf.mxu1 }
 0x1dd   :  { %v284_v36 = vmax.f32 %v279_v34, 0.0 }
 0x1de   :  { %v281_v37 = vpop.f32.mrf.mxu1 }
 0x1df   :  { %v285_v38 = vpack.c.bf16 %v284_v36, %v284_v36 }
 0x1e0   :  { %v498_v39 = vpop.f32.mrf.mxu1 }
 0x1e1   :  { %516 = vmatmul.mubr.bf16.vlgmr.msra.gmra.mxu0 %v285_v38 }
 0x2a1   :  { %v384_v40 = vpop.f32.mrf.mxu0 }
 0x2a2   :  { %390 = vst [vmem:[#allocation10] sm:$0xff] %v384_v40 }
 0x2a3   :  { %v517_v41 = vpop.f32.mrf.mxu0 }
 0x2a4   :  { %643 = shalt.err (!%p640_p10)
}
 0x2a5   :  { %400 = dma.vmem_to_hbm [thread:$0]  %s398_s3, 128, %s752_s4, [#allocation4]   ;;  %v387_v42 = vpop.f32.mrf.mxu0 }
 0x2a7   :  { %v518_v43 = vpop.f32.mrf.mxu0 }
 0x2a8   :  { %658 = dma.done.wait [#allocation4], 128  }
 0x2a9   :  { %659 = vsyncadd [#allocation4], 4294967168 }
 0x2aa   :  { %404 = vsyncpa [#allocation3], 1 }
 0x2ab   :  { %405 = vsyncpa [#allocation6], 1 }
 0x2ac   :  { %406 = vsyncpa [#allocation9], 1 }
 0x2ad   :  { %407 = vsyncpa [#allocation4], 1 }

</bundles_post_ra>
